<compile_context>
chip_gen: v7x
topology: tpu7x:2x2x1
jax: 0.10.0
libtpu: 0.0.40
codegen_flags: <defaults>
</compile_context>

<pallas_src>
import jax
import jax.numpy as jnp
from jax.experimental import pallas as pl
from jax.experimental.pallas import tpu as pltpu


def _context_gating_kernel(x_ref, w_ref, b_ref, o_ref):
    # x_ref: (C, TILE_S)  channels on sublanes, spatial on lanes (lane-dense)
    # w_ref: (C, C)       PyTorch (out, in) layout, pre-cast to f32
    # b_ref: (C, 1)       pre-cast to f32, broadcast over lanes
    xf = x_ref[...].astype(jnp.float32)
    # lin[o, s] = sum_c W[o, c] * x[c, s] + b[o]   (== Linear over channel dim)
    lin = jnp.dot(w_ref[...], xf, preferred_element_type=jnp.float32) + b_ref[...]
    o_ref[...] = (xf * jax.nn.sigmoid(lin)).astype(o_ref.dtype)


def context_gating(x_nchw, weight, bias, *, tile_s=2048, vmem_budget_bytes=24 << 20):
    """out = x * sigmoid(Linear_C->C(x over channel dim)), NCHW in / NCHW out.

    x_nchw: (N, C, H, W); weight: (C, C) [PyTorch (out, in)]; bias: (C,)
    """
    N, C, H, W = x_nchw.shape
    S = H * W
    x_ncs = x_nchw.reshape(N, C, S)          # free reshape (contiguous)

    itemsize = jnp.dtype(x_nchw.dtype).itemsize
    # Lane-dense spatial tile: multiple of 128, sized so the double-buffered
    # input + output blocks (4 * C * tile * itemsize) stay within a VMEM
    # budget that is safe even on v7x's smaller (64 MiB) VMEM.
    max_tile_vmem = max(vmem_budget_bytes // max(4 * C * itemsize, 1), 128)
    tile = min(int(tile_s), int(max_tile_vmem), pl.cdiv(S, 128) * 128)
    tile = max((tile // 128) * 128, 128)

    grid = (N, pl.cdiv(S, tile))             # ragged last block handled by Pallas

    w_f32 = weight.astype(jnp.float32)               # (out, in), resident in VMEM
    b_col = bias.astype(jnp.float32).reshape(C, 1)   # broadcast over lanes

    # Explicit VMEM limit: double-buffered in/out tiles + resident W/b,
    # with 2x headroom, clamped well under physical VMEM on all chips.
    block_bytes = C * tile * itemsize
    needed = 4 * block_bytes + C * C * 4 + C * 4
    vmem_limit = int(min(max(2 * needed, 16 << 20), 48 << 20))

    out_ncs = pl.pallas_call(
        _context_gating_kernel,
        out_shape=jax.ShapeDtypeStruct((N, C, S), x_nchw.dtype),
        grid_spec=pltpu.PrefetchScalarGridSpec(
            num_scalar_prefetch=0,
            grid=grid,
            in_specs=[
                pl.BlockSpec((None, C, tile), lambda n, s: (n, 0, s)),
                pl.BlockSpec((C, C), lambda n, s: (0, 0)),
                pl.BlockSpec((C, 1), lambda n, s: (0, 0)),
            ],
            out_specs=pl.BlockSpec((None, C, tile), lambda n, s: (n, 0, s)),
        ),
        compiler_params=pltpu.CompilerParams(
            dimension_semantics=("parallel", "parallel"),
            vmem_limit_bytes=vmem_limit,
        ),
    )(x_ncs, w_f32, b_col)

    return out_ncs.reshape(N, C, H, W)


def _reference(x, weight, bias):
    lin = jnp.einsum("nhwc,oc->nhwo", jnp.transpose(x, (0, 2, 3, 1)), weight) + bias
    return x * jax.nn.sigmoid(jnp.transpose(lin, (0, 3, 1, 2)))


if __name__ == "__main__":
    key = jax.random.PRNGKey(0)
    kx, kw, kb, kx2 = jax.random.split(key, 4)

    N, C, H, W = 2, 4, 16, 16
    x = jax.random.normal(kx, (N, C, H, W), dtype=jnp.float32)

    # Deterministic synthetic parameters (shapes follow nn.Linear(C, C)).
    bound = 1.0 / jnp.sqrt(C)
    weight = jax.random.uniform(kw, (C, C), minval=-bound, maxval=bound,
                                dtype=jnp.float32)   # (out, in)
    bias = jax.random.uniform(kb, (C,), minval=-bound, maxval=bound,
                              dtype=jnp.float32)

    out = context_gating(x, weight, bias)
    out = jax.block_until_ready(out)
    ref = _reference(x, weight, bias)
    assert out.shape == (N, C, H, W)
    assert jnp.allclose(out, ref, atol=1e-5, rtol=1e-5)

    # Ragged spatial size exercises the clipped-edge-block path (S = 70 < 128).
    x2 = jax.random.normal(kx2, (N, C, 10, 7), dtype=jnp.float32)
    out2 = jax.block_until_ready(context_gating(x2, weight, bias))
    ref2 = _reference(x2, weight, bias)
    assert out2.shape == x2.shape
    assert jnp.allclose(out2, ref2, atol=1e-5, rtol=1e-5)

    print("KERNEL_OK")
</pallas_src>

<mosaic_0001>
module attributes {stable_mosaic.version = 11 : i64} {
  func.func @_context_gating_kernel(%arg0: i32, %arg1: i32, %arg2: memref<1x4x256xf32, #tpu.memory_space<vmem>>, %arg3: memref<4x4xf32, #tpu.memory_space<vmem>>, %arg4: memref<4x1xf32, #tpu.memory_space<vmem>>, %arg5: memref<1x4x256xf32, #tpu.memory_space<vmem>>) attributes {dimension_semantics = [#tpu.dimension_semantics<parallel>, #tpu.dimension_semantics<parallel>], iteration_bounds = array<i64: 2, 1>, scalar_prefetch = 0 : i64, scratch_operands = 0 : i64, tpu.core_type = #tpu.core_type<tc>, window_params = [{transform_indices = @transform_0, window_bounds = array<i64: 1, 4, 256>}, {pipeline_mode = #tpu.pipeline_mode<synchronous>, transform_indices = @transform_1, window_bounds = array<i64: 4, 4>}, {pipeline_mode = #tpu.pipeline_mode<synchronous>, transform_indices = @transform_2, window_bounds = array<i64: 4, 1>}, {transform_indices = @transform_3, window_bounds = array<i64: 1, 4, 256>}]} {
    %c0 = arith.constant 0 : index
    %c0_0 = arith.constant 0 : index
    %c0_1 = arith.constant 0 : index
    %0 = vector.load %arg2[%c0, %c0_0, %c0_1] : memref<1x4x256xf32, #tpu.memory_space<vmem>>, vector<1x4x256xf32>
    %1 = vector.shape_cast %0 : vector<1x4x256xf32> to vector<4x256xf32>
    %c0_2 = arith.constant 0 : index
    %c0_3 = arith.constant 0 : index
    %2 = vector.load %arg3[%c0_2, %c0_3] : memref<4x4xf32, #tpu.memory_space<vmem>>, vector<4x4xf32>
    %cst = arith.constant dense<0.000000e+00> : vector<4x256xf32>
    %3 = tpu.matmul %2, %1, %cst {dimension_numbers = #tpu.dot_dimension_numbers<[1], [0], [0], [1], [0, 0, 1, 1], [], []>} : vector<4x4xf32>, vector<4x256xf32>, vector<4x256xf32> -> vector<4x256xf32>
    %c0_4 = arith.constant 0 : index
    %c0_5 = arith.constant 0 : index
    %4 = vector.load %arg4[%c0_4, %c0_5] : memref<4x1xf32, #tpu.memory_space<vmem>>, vector<4x1xf32>
    %5 = vector.broadcast %4 : vector<4x1xf32> to vector<4x256xf32>
    %6 = arith.addf %3, %5 : vector<4x256xf32>
    %7 = arith.negf %6 : vector<4x256xf32>
    %8 = math.exp %7 : vector<4x256xf32>
    %cst_6 = arith.constant 1.000000e+00 : f32
    %9 = vector.broadcast %cst_6 : f32 to vector<4x256xf32>
    %10 = arith.addf %9, %8 : vector<4x256xf32>
    %11 = arith.divf %9, %10 : vector<4x256xf32>
    %12 = arith.mulf %1, %11 : vector<4x256xf32>
    %c0_7 = arith.constant 0 : index
    %c0_8 = arith.constant 0 : index
    %c0_9 = arith.constant 0 : index
    %13 = vector.load %arg5[%c0_7, %c0_8, %c0_9] : memref<1x4x256xf32, #tpu.memory_space<vmem>>, vector<1x4x256xf32>
    %14 = vector.shape_cast %13 : vector<1x4x256xf32> to vector<4x256xf32>
    %15 = vector.shape_cast %12 : vector<4x256xf32> to vector<1x4x256xf32>
    tpu.vector_store %arg5[%c0_7, %c0_8, %c0_9], %15 {strides = array<i32>} : memref<1x4x256xf32, #tpu.memory_space<vmem>>, vector<1x4x256xf32>,
    return
  }
  func.func @transform_0(%arg0: i32, %arg1: i32) -> (i32, i32, i32) {
    %c0_i32 = arith.constant 0 : i32
    %c0_i32_0 = arith.constant 0 : i32
    return %arg0, %c0_i32, %arg1 : i32, i32, i32
  }
  func.func @transform_1(%arg0: i32, %arg1: i32) -> (i32, i32) {
    %c0_i32 = arith.constant 0 : i32
    %c0_i32_0 = arith.constant 0 : i32
    %c0_i32_1 = arith.constant 0 : i32
    return %c0_i32, %c0_i32_0 : i32, i32
  }
  func.func @transform_2(%arg0: i32, %arg1: i32) -> (i32, i32) {
    %c0_i32 = arith.constant 0 : i32
    %c0_i32_0 = arith.constant 0 : i32
    %c0_i32_1 = arith.constant 0 : i32
    return %c0_i32, %c0_i32_0 : i32, i32
  }
  func.func @transform_3(%arg0: i32, %arg1: i32) -> (i32, i32, i32) {
    %c0_i32 = arith.constant 0 : i32
    %c0_i32_0 = arith.constant 0 : i32
    return %arg0, %c0_i32, %arg1 : i32, i32, i32
  }
}

</mosaic_0001>

<bundles_post_ra>
// kernel: tpu_custom_call.1
= control target key start
LH: loop header
LB: loop body
LE: loop exit
PB: predicated region body
PF: predicated region fallthrough
CT: control target
= control target key end

     0   :  { %8 = vsyncpa [#allocation3], 0  ;;  %s832_s0 = inlined_call_operand.hbm [shape: f32[2,4,256], index: 0, kind: input, shape index: {}]   ;;  %s833_s1 = inlined_call_operand.vmem [shape: f32[4,4], index: 1, kind: input, shape index: {}]   ;;  %s834_s2 = inlined_call_operand.vmem [shape: f32[4,1], index: 2, kind: input, shape index: {}]   ;;  %s835_s3 = inlined_call_operand.hbm [shape: f32[2,4,256], index: 3, kind: output, shape index: {}]  }
   0x1   :  { %10 = vsyncpa [#allocation3 + $0x1], 0 }
   0x2   :  { %11 = vsyncpa [#allocation4], 0 }
   0x3   :  { %13 = vsyncpa [#allocation4 + $0x1], 0  ;;  %s650_s12 = smov 0   ;;  %s652_s13 = smov 0  }
   0x4   :  { %s654_s14 = smov 0   ;;  %s656_s15 = smov 0  }
   0x5   :  { %s658_s16 = smov 0   ;;  %s660_s17 = smov 0  }
   0x6 LB: > { %s416_s18 = sadd.s32 4294967295, %s624_s17   ;;  %s417_s19 = sadd.s32 4294967294, %s624_s17   ;;  %s624_s17 = sphi %s660_s17, %s19_s17   ;;  %s620_s16 = sphi %s658_s16, %s851_s16   ;;  %s616_s15 = sphi %s656_s15, %s850_s15   ;;  %s612_s14 = sphi %s654_s14, %s849_s14   ;;  %s608_s13 = sphi %s652_s13, %s848_s13   ;;  %s604_s12 = sphi %s650_s12, %s847_s12  }
   0x7   : > { %s31_s20 = sadd.s32 1, %s620_s16  ;;  %s40_s21 = sadd.s32 1, %s612_s14 }
   0x8   : > { %p33_p0 = scmp.ge.s32.totalorder %s31_s20, 2  ;;  %p47_p1 = scmp.ne.s32.totalorder %s612_s14, %s608_s13 }
   0x9   : > { %p48_p2 = scmp.eq.s32.totalorder %s624_s17, 0  ;;  %p53_p3 = scmp.ne.s32.totalorder %s608_s13, %s604_s12 }
   0xa   : > { %s853_s20 = smov (%p33_p0, %s31_s20), 0  ;;  %p54_p5 = scmp.eq.s32.totalorder %s416_s18, 0 }
   0xb   : > { %p691_p4 = por %p48_p2, %p47_p1  ;;  %s35_s23 = ssub.s32 %s620_s16, %s853_s20 }
   0xc   : > { %p121_p6 = scmp.eq.s32.totalorder %s416_s18, 1  ;;  %p38_p7 = scmp.eq.s32.totalorder %s35_s23, 0 }
   0xd   : > { %p697_p8 = por %p54_p5, %p53_p3  ;;  %p127_p10 = scmp.eq.s32.totalorder %s417_s19, 1 }
   0xe   : > { %p701_p9 = por %p121_p6, %p47_p1  ;;  %p450_p13 = scmp.lt.s32.totalorder %s624_s17, 2 }
   0xf   : > { %s706_s26 = scalar_select %p38_p7, %s612_s14, %s40_s21  }
  0x10   : > { %s839_s25 = scalar_select %p701_p9, 1, 0 }
  0x11   : > { %p708_p11 = por %p127_p10, %p53_p3  ;;  %s153_s28 = sand.u32 1, %s612_s14  }
  0x12   : > { %s420_s29 = sshll.u32 %s153_s28, 3  ;;  %s436_s30 = sshll.u32 %s620_s16, 7 }
  0x13   : > { %s840_s27 = scalar_select %p708_p11, 1, 0 }
  0x14   : > { %s719_s6 = scalar_lea.hbm %s832_s0, %s436_s30  ;;  %s157_s7 = scalar_lea.vmem [#allocation2], %s420_s29 }
  0x15   : > { %s167_s8 = sshll.u32 %s157_s7, 4  ;;  %p725_p0 = pnand %p450_p13, %p691_p4  ;;  %s721_s8 = int_to_ptr.vmem [resolvable:$true] %s167_s8 }
  0x16   : > { %s154_s10 = scalar_lea.sflag [#allocation3], %s153_s28  ;;  %s512_s11 = scalar_lea.hbm %s719_s6, 128 }
  0x17   : > { %p513_p3 = scmp.ne.s32.totalorder %s719_s6, %s512_s11  ;;  %p514_p5 = pneg %p725_p0 }
  0x18   : > { %s517_s21 = scalar_lea.hbm %s832_s0, 256  ;;  %p518_p4 = scmp.lt.u32.totalorder %s719_s6, %s832_s0 }
  0x19   : > { %p515_p6 = pnand %p514_p5, %p513_p3  ;;  %p519_p10 = scmp.lt.u32.totalorder %s517_s21, %s512_s11 }
  0x1a   : > { %p521_p12 = scmp.lt.u32.totalorder %s512_s11, %s719_s6 }
  0x1b   : > { %p516_p7 = pneg %p515_p6  ;;  %p520_p13 = por %p519_p10, %p518_p4 }
  0x1d   : > { %p522_p1 = por %p521_p12, %p520_p13 }
  0x1f   : > { %p523_p2 = pnand %p522_p1, %p516_p7 }
  0x21   : > { %526 = shalt.err (!%p523_p2)
}
  0x22   : > { %s527_s28 = scalar_lea.vmem %s721_s8, 128  ;;  %s626_s29 = smov [#allocation2]  }
  0x23   : > { %p528_p3 = scmp.ne.s32.totalorder %s721_s8, %s527_s28  ;;  %s532_s30 = sshll.u32 %s626_s29, 4  ;;  %s533_s30 = int_to_ptr.vmem [resolvable:$false] %s532_s30 }
  0x24   : > { %s534_s4 = scalar_lea.vmem %s533_s30, 256  ;;  %p535_p9 = scmp.lt.s32.totalorder %s721_s8, %s533_s30 }
  0x25   : > { %p530_p6 = pnand %p528_p3, %p514_p5  ;;  %p536_p4 = scmp.lt.s32.totalorder %s534_s4, %s527_s28 }
  0x27   : > { %p531_p11 = pneg %p530_p6  ;;  %p537_p10 = por %p536_p4, %p535_p9 }
  0x29   : > { %p538_p12 = pnand %p537_p10, %p531_p11 }
  0x2b   : > { %541 = shalt.err (!%p538_p12)
}
  0x2c   : > { %445 = dma.hbm_to_vmem [thread:$0]  (!%p725_p0), %s719_s6, 128, %s721_s8, %s154_s10  }
  0x2d   : > { %p842_p1 = scmp.lt.s32.totalorder %s624_s17, 3  ;;  %p843_p2 = scmp.ge.s32.totalorder %s624_s17, 1 }
  0x2f   : > { %p173_p5 = pnand %p843_p2, %p842_p1 }
  0x30   : > { %s761_s5 = sand.u32 (!%p173_p5), 1, %s608_s13  }
  0x31   : > { %176 = sbr.rel (%p173_p5) target bundleno = 321 (0x141), region = 32  ;;  %s424_s7 = sshll.u32 (!%p173_p5), %s761_s5, 3 }
  0x32   : > { %s179_s11 = scalar_lea.sflag (!%p173_p5), [#allocation3], %s761_s5  ;;  %s182_s9 = scalar_lea.vmem (!%p173_p5), [#allocation2], %s424_s7 }
  0x38   : > { %595 = dma.done.wait (%p697_p8), %s179_s11, 128  }
  0x39   : > { %597 = vsyncadd (%p697_p8), %s179_s11, 4294967168  ;;  %v627_v0 = vmov 0.0   ;;  %v628_v1 = vmov 0   ;;  %v207_v2 = vld [vmem:[%s182_s9] sm:$0xff]  ;;  %vm221_vm0 = vcmask 1043456   ;;  %vm217_vm1 = vcmask 31744  }
  0x3a   : > { %290 = vmatprep.mubr.f32.mxu0 %v627_v0  ;;  %502 = vset.pattern.permute.xlu0 %v628_v1  ;;  %v209_v3 = vld [vmem:[%s834_s2] sm:$0xf]  ;;  %v216_v4 = vcombine.high %v207_v2, %v207_v2  ;;  %s437_s24 = sshll.u32 %s616_s15, 7  ;;  %s204_s19 = scalar_lea.vmem [#allocation5], %s424_s7 }
  0x3b   : > { %212 = vperm.xlu0 %502, %v209_v3   ;;  %v208_v5 = vld [vmem:[%s833_s1] sm:$0xf]  ;;  %s332_s21 = sshll.u32 %s204_s19, 4  ;;  %s783_s28 = scalar_lea.hbm %s835_s3, %s437_s24  ;;  %s785_s21 = int_to_ptr.vmem [resolvable:$true] %s332_s21 }
  0x3c   : > { %426 = vmatprep.subr.msk.mxu0 %vm221_vm0, %v216_v4  ;;  %s316_s29 = scalar_lea.sflag [#allocation4], %s761_s5  ;;  %s542_s30 = scalar_lea.vmem %s785_s21, 128 }
  0x3d   : > { %427 = vmatpush1.msk.msra.mxu0 %vm221_vm0, %v207_v2  ;;  %p543_p8 = scmp.ne.s32.totalorder %s785_s21, %s542_s30  ;;  %p844_p9 = scmp.ne.s32.totalorder %s839_s25, 0 }
  0x3e   : > { %428 = vmatmul.mubr.msk.f32.vlgmr.msra.gmra.mrb[0].mxu0 %vm217_vm1, %v208_v5  ;;  %s629_s15 = smov [#allocation5]  }
  0x3f   : > { %p544_p11 = pnand %p543_p8, %p844_p9  ;;  %s546_s4 = sshll.u32 %s629_s15, 4  ;;  %s547_s4 = int_to_ptr.vmem [resolvable:$false] %s546_s4 }
  0x40   : > { %s548_s7 = scalar_lea.vmem %s547_s4, 256  ;;  %p549_p7 = scmp.lt.s32.totalorder %s785_s21, %s547_s4 }
  0x41   : > { %p545_p0 = pneg %p544_p11  ;;  %p550_p13 = scmp.lt.s32.totalorder %s548_s7, %s542_s30 }
  0x43   : > { %p551_p3 = por %p550_p13, %p549_p7 }
  0x45   : > { %p552_p6 = pnand %p551_p3, %p545_p0 }
  0xba   : > { %v213_v6 = vpop.permute.xlu0 %212 }
 0x111   : > { %v292_v7 = vpop.f32.mrb[0].mxu0 }
 0x112   : > { %v293_v8 = vadd.f32 %v292_v7, %v213_v6  ;;  %v294_v9 = vpop.f32.mrb[1].mxu0 }
 0x113   : > { %v295_v10 = vadd.f32 %v294_v9, %v213_v6 }
 0x114   : > { %v429_v11 = vmul.f32 -1.442695, %v293_v8 }
 0x115   : > { %v430_v12 = vmul.f32 -1.442695, %v295_v10 }
 0x116   : > { %504 = vpow2.f32 %v429_v11 }
 0x117   : > { %506 = vpow2.f32 %v430_v12 }
 0x120   : > { %v505_v13 = vpop.eup %504 }
 0x121   : > { %v507_v14 = vpop.eup %506  ;;  %v303_v15 = vadd.f32 1.0, %v505_v13 }
 0x122   : > { %v304_v16 = vadd.f32 1.0, %v507_v14 }
 0x123   : > { %508 = vrcp.f32 %v303_v15 }
 0x124   : > { %510 = vrcp.f32 %v304_v16 }
 0x12d   : > { %v509_v17 = vpop.eup %508 }
 0x12e   : > { %v511_v18 = vpop.eup %510 }
 0x12f   : > { %v311_v19 = vcombine.low %v509_v17, %v511_v18 }
 0x131   : > { %v313_v20 = vmul.f32 %v311_v19, %v207_v2 }
 0x133   : > { %314 = vst [vmem:[%s204_s19] sm:$0xff] %v313_v20 }
 0x134   : > { %555 = shalt.err (!%p552_p6)
}
 0x135   : > { %s556_s5 = scalar_lea.hbm %s783_s28, 128  ;;  %s560_s6 = scalar_lea.hbm %s835_s3, 256 }
 0x136   : > { %p557_p4 = scmp.ne.s32.totalorder %s783_s28, %s556_s5  ;;  %p561_p1 = scmp.lt.u32.totalorder %s783_s28, %s835_s3 }
 0x137   : > { %p562_p2 = scmp.lt.u32.totalorder %s560_s6, %s556_s5  ;;  %p564_p8 = scmp.lt.u32.totalorder %s556_s5, %s783_s28 }
 0x138   : > { %p558_p10 = pnand %p557_p4, %p844_p9 }
 0x139   : > { %p563_p5 = por %p562_p2, %p561_p1 }
 0x13a   : > { %p559_p12 = pneg %p558_p10 }
 0x13b   : > { %p565_p11 = por %p564_p8, %p563_p5 }
 0x13d   : > { %p566_p0 = pnand %p565_p11, %p559_p12 }
 0x13f   : > { %569 = shalt.err (!%p566_p0)
}
 0x140   : > { %440 = dma.vmem_to_hbm [thread:$0]  (%p844_p9), %s785_s21, 128, %s783_s28, %s316_s29  }
 0x141 PF: > { %s344_s18 = sand.u32 1, %s604_s12   ;;  %p845_p7 = scmp.ne.s32.totalorder %s840_s27, 0 }
 0x142   : > { %p846_p13 = scmp.ge.s32.totalorder %s624_s17, 2  ;;  %s345_s24 = scalar_lea.sflag [#allocation4], %s344_s18 }
 0x144   : > { %p447_p3 = pnand %p846_p13, %p845_p7 }
 0x146   : > { %599 = dma.done.wait (!%p447_p3), %s345_s24, 128  }
 0x147   : > { %601 = vsyncadd (!%p447_p3), %s345_s24, 4294967168  ;;  %s19_s17 = sadd.s32 1, %s624_s17   ;;  %s847_s12 = smov %s608_s13 }
 0x148   : > { %p16_p6 = scmp.ge.s32.totalorder %s19_s17, 4   ;;  %s848_s13 = smov %s612_s14 }
 0x149   : > { %s849_s14 = smov %s706_s26  ;;  %s850_s15 = smov %s620_s16 }
 0x14a   : > { %s851_s16 = smov %s853_s20  ;;  %18 = sbr.rel (!%p16_p6) target bundleno = 6 (0x6), region = 77 }
 0x151   :  { %350 = vsyncpa [#allocation3], 1 }
 0x152   :  { %352 = vsyncpa [#allocation3 + $0x1], 1 }
 0x153   :  { %353 = vsyncpa [#allocation4], 1 }
 0x154   :  { %355 = vsyncpa [#allocation4 + $0x1], 1 }

</bundles_post_ra>
